<compile_context>
chip_gen: v7x
topology: tpu7x:2x2x1
jax: 0.10.0
libtpu: 0.0.40
codegen_flags: <defaults>
</compile_context>

<pallas_src>
import functools

import numpy as np
import jax
import jax.numpy as jnp
from jax.experimental import pallas as pl
from jax.experimental.pallas import tpu as pltpu

LN_EPS = 1e-5


# ----------------------------- fused Pallas kernel -----------------------------

def _interaction_attention_kernel(x_ref, wqkv_ref, bqkv_ref, wo3_ref, bo_ref,
                                  gamma_ref, beta_ref, o_ref, heads_ref, *,
                                  num_heads):
    """Whole layer in one invocation: fused MHA + residual + LayerNorm.

    x_ref     : [B, L, C]      f32
    wqkv_ref  : [C, 3C]        bf16 (pre-transposed; 1/sqrt(dh) folded into Q columns)
    bqkv_ref  : [1, 3C]        f32  (1/sqrt(dh) folded into Q part)
    wo3_ref   : [H, dh, C]     bf16 (out_proj.weight.T, head-major)
    bo_ref    : [1, C]         f32
    gamma_ref : [1, C]         f32
    beta_ref  : [1, C]         f32
    o_ref     : [B, L, C]      f32
    heads_ref : [3H, B*L, dh]  f32  VMEM scratch (head-major repack buffer)
    """
    B, L, C = x_ref.shape
    H = num_heads
    dh = C // H
    n = B * L

    x = x_ref[...].reshape(n, C)                      # merges leading dims only (free)

    # ---- fused QKV projection: one [n, C] @ [C, 3C] bf16 MXU matmul, f32 accumulate.
    qkv = jnp.dot(x.astype(jnp.bfloat16), wqkv_ref[...],
                  preferred_element_type=jnp.float32) + bqkv_ref[...]      # [n, 3C] f32

    # ---- single lane -> sublane repack: heads move from lanes to a leading batch dim.
    for j in range(3 * H):                            # static unroll
        heads_ref[j] = qkv[:, j * dh:(j + 1) * dh]
    qkv_h = heads_ref[...]                            # [3H, n, dh]
    q = qkv_h[0 * H:1 * H].reshape(H * B, L, dh)      # leading-dim slice/reshape: free
    k = qkv_h[1 * H:2 * H].reshape(H * B, L, dh)
    v = qkv_h[2 * H:3 * H].reshape(H * B, L, dh)

    # ---- attention, batched over (head, batch): no per-head matmuls, no k.T transpose.
    s = jnp.einsum("nld,nmd->nlm", q, k,
                   preferred_element_type=jnp.float32)                     # [H*B, L, L]
    s = s - jnp.max(s, axis=-1, keepdims=True)
    p = jnp.exp(s)
    p = p * pl.reciprocal(jnp.sum(p, axis=-1, keepdims=True), approx=True)
    av = jnp.einsum("nlm,nmd->nld", p, v,
                    preferred_element_type=jnp.float32)                    # [H*B, L, dh]

    # ---- output projection: batched over heads, then reduced over heads
    #      (replaces the old H-way lane concat followed by a single [n,C]@[C,C]).
    av = av.reshape(H, n, dh)
    out_h = jnp.einsum("hrd,hdc->hrc", av.astype(jnp.bfloat16), wo3_ref[...],
                       preferred_element_type=jnp.float32)                 # [H, n, C]
    attn = jnp.sum(out_h, axis=0) + bo_ref[...]                            # [n, C]
    # TODO(synk): attention dropout and the post-attention nn.Dropout are identity
    # (eval / inference mode); training-mode parity needs pltpu.prng_random_bits masks.

    # ---- residual + LayerNorm (f32); yc reused for variance and the normalized output.
    y = x + attn
    inv_c = 1.0 / C
    mu = jnp.sum(y, axis=-1, keepdims=True) * inv_c
    yc = y - mu
    var = jnp.sum(yc * yc, axis=-1, keepdims=True) * inv_c
    o_ref[...] = (yc * jax.lax.rsqrt(var + LN_EPS) * gamma_ref[...]
                  + beta_ref[...]).reshape(B, L, C)


# ----------------------------- wrapper -----------------------------

@functools.partial(jax.jit, static_argnames=("num_heads",))
def interaction_attention_layer(tgt, kparams, num_heads):
    """tgt: [L, B, C] (PyTorch seq-first, batch_first=False). Returns [L, B, C]."""
    L, B, C = tgt.shape
    if C % num_heads != 0:
        raise ValueError(f"d_model={C} must be divisible by nhead={num_heads}")
    H = num_heads
    dh = C // H
    n = B * L

    # Batch-first for the kernel (row-wise ops see [B*L, C]; attention batches over B,H).
    # For production, carry activations batch-first end-to-end to drop this transpose.
    x = jnp.transpose(tgt, (1, 0, 2)).astype(jnp.float32)          # [B, L, C]

    # Trace-time working-set guard: this kernel keeps weights + all intermediates
    # untiled in VMEM.  Fine for small d_model; at production sizes the projections
    # must be tiled over a grid instead (first limit hit is v7x's 64 MiB VMEM).
    vmem_bytes = (
        2 * n * C * 4                 # x + y
        + n * 3 * C * 4               # qkv intermediate
        + 3 * H * n * dh * 4          # head-major scratch
        + 2 * H * B * L * L * 4       # scores + probs
        + H * n * C * 4               # per-head out-proj partials
        + (3 * C * C + C * C) * 2     # bf16 weights
    )
    vmem_limit = 32 * 1024 * 1024
    if 2 * vmem_bytes > vmem_limit:
        raise ValueError(
            f"untiled working set ~{vmem_bytes / 2**20:.1f} MiB exceeds the VMEM budget;"
            " tile the QKV / output projections over a grid for this d_model/seq_len")

    flops = (2 * n * C * 3 * C            # QKV projection
             + 4 * H * B * L * L * dh     # q@k^T and p@v
             + 2 * n * C * C              # output projection
             + 10 * n * C)                # softmax / LayerNorm elementwise (rough)
    bytes_accessed = (2 * n * C * 4                      # activations in + out
                      + (3 * C * C + C * C) * 2          # bf16 weights
                      + 7 * C * 4)                       # biases + LN params

    out = pl.pallas_call(
        functools.partial(_interaction_attention_kernel, num_heads=H),
        # TODO(synk): C=32 stores are lane-masked; production d_model should be a
        # multiple of 128 (or the output presented as a lane-dense slab).
        out_shape=jax.ShapeDtypeStruct((B, L, C), jnp.float32),
        # grid=() : single invocation -- B is folded into the matmul rows, so there is
        # no serial per-batch grid loop and the constant weights are DMA'd to VMEM once.
        scratch_shapes=[pltpu.VMEM((3 * H, n, dh), jnp.float32)],
        compiler_params=pltpu.CompilerParams(vmem_limit_bytes=vmem_limit),
        cost_estimate=pl.CostEstimate(flops=flops,
                                      transcendentals=H * B * L * L,
                                      bytes_accessed=bytes_accessed),
    )(x, kparams["wqkv"], kparams["bqkv"], kparams["wo3"], kparams["bo"],
      kparams["gamma"], kparams["beta"])

    return jnp.transpose(out, (1, 0, 2))


# ----------------------------- params -----------------------------

def init_torch_params(key, C):
    """Parameters in PyTorch layout (in_proj_weight [3C, C], out_proj.weight [C, C])."""
    k1, k2, k3, k4 = jax.random.split(key, 4)
    lim_in = float(np.sqrt(6.0 / (C + 3 * C)))
    lim_out = float(np.sqrt(6.0 / (C + C)))
    return {
        "in_w": jax.random.uniform(k1, (3 * C, C), jnp.float32, -lim_in, lim_in),
        "in_b": 0.01 * jax.random.normal(k3, (3 * C,), jnp.float32),
        "out_w": jax.random.uniform(k2, (C, C), jnp.float32, -lim_out, lim_out),
        "out_b": 0.01 * jax.random.normal(k4, (C,), jnp.float32),
        "ln_w": jnp.ones((C,), jnp.float32),
        "ln_b": jnp.zeros((C,), jnp.float32),
    }


def to_kernel_params(p, num_heads):
    """One-time prep: transpose, fold the attention scale, cast MXU weights to bf16."""
    C = p["out_w"].shape[0]
    dh = C // num_heads
    scale = dh ** -0.5
    # Fold 1/sqrt(dh) into the Q columns of the fused QKV projection (and its bias).
    qscale = jnp.concatenate(
        [jnp.full((C,), scale, jnp.float32), jnp.ones((2 * C,), jnp.float32)])
    wqkv = jnp.transpose(p["in_w"]).astype(jnp.float32) * qscale[None, :]   # [C, 3C]
    bqkv = p["in_b"].reshape(1, 3 * C).astype(jnp.float32) * qscale[None, :]
    wo3 = jnp.transpose(p["out_w"]).reshape(num_heads, dh, C)               # [H, dh, C]
    return {
        "wqkv": wqkv.astype(jnp.bfloat16),   # bf16: MXU-native, half the DMA/VMEM bytes
        "bqkv": bqkv,                        # f32 (added after f32 accumulation)
        "wo3": wo3.astype(jnp.bfloat16),
        "bo": p["out_b"].reshape(1, C).astype(jnp.float32),
        "gamma": p["ln_w"].reshape(1, C).astype(jnp.float32),
        "beta": p["ln_b"].reshape(1, C).astype(jnp.float32),
    }


# ----------------------------- pure-JAX reference -----------------------------

def reference_forward(tgt, p, num_heads):
    L, B, C = tgt.shape
    dh = C // num_heads
    x = tgt.reshape(L * B, C)
    qkv = x @ p["in_w"].T + p["in_b"]
    q, k, v = jnp.split(qkv, 3, axis=-1)

    def heads(t):
        return t.reshape(L, B, num_heads, dh).transpose(1, 2, 0, 3)   # [B, H, L, dh]

    q, k, v = heads(q), heads(k), heads(v)
    s = jnp.einsum("bhld,bhmd->bhlm", q, k) * (dh ** -0.5)
    a = jax.nn.softmax(s, axis=-1)
    o = jnp.einsum("bhlm,bhmd->bhld", a, v)
    o = o.transpose(2, 0, 1, 3).reshape(L * B, C)
    o = o @ p["out_w"].T + p["out_b"]
    y = tgt + o.reshape(L, B, C)
    mu = y.mean(-1, keepdims=True)
    var = ((y - mu) ** 2).mean(-1, keepdims=True)
    return (y - mu) * jax.lax.rsqrt(var + LN_EPS) * p["ln_w"] + p["ln_b"]


# ----------------------------- main -----------------------------

if __name__ == "__main__":
    key = jax.random.PRNGKey(0)
    L, B, C, H = 8, 2, 32, 4          # seq, batch, d_model, nhead

    k1, k2 = jax.random.split(key)
    tgt = jax.random.normal(k1, (L, B, C), jnp.float32)

    torch_params = init_torch_params(k2, C)
    kparams = to_kernel_params(torch_params, H)

    out = interaction_attention_layer(tgt, kparams, num_heads=H)
    jax.block_until_ready(out)

    ref = reference_forward(tgt, torch_params, H)
    # bf16 projection weights in the kernel vs. an all-f32 reference -> slightly looser
    # atol; softmax/LayerNorm math is f32 in both.
    np.testing.assert_allclose(np.asarray(out), np.asarray(ref), rtol=2e-2, atol=3e-2)

    print("KERNEL_OK")
</pallas_src>

<mosaic_0001>
module attributes {stable_mosaic.version = 11 : i64} {
  func.func @_interaction_attention_kernel(%arg0: memref<2x8x32xf32, #tpu.memory_space<vmem>>, %arg1: memref<32x96xbf16, #tpu.memory_space<vmem>>, %arg2: memref<1x96xf32, #tpu.memory_space<vmem>>, %arg3: memref<4x8x32xbf16, #tpu.memory_space<vmem>>, %arg4: memref<1x32xf32, #tpu.memory_space<vmem>>, %arg5: memref<1x32xf32, #tpu.memory_space<vmem>>, %arg6: memref<1x32xf32, #tpu.memory_space<vmem>>, %arg7: memref<2x8x32xf32, #tpu.memory_space<vmem>>, %arg8: memref<12x16x8xf32, #tpu.memory_space<vmem>>) attributes {dimension_semantics = [], scalar_prefetch = 0 : i64, scratch_operands = 1 : i64, tpu.core_type = #tpu.core_type<tc>} {
    %c0 = arith.constant 0 : index
    %c0_0 = arith.constant 0 : index
    %c0_1 = arith.constant 0 : index
    %0 = vector.load %arg0[%c0, %c0_0, %c0_1] : memref<2x8x32xf32, #tpu.memory_space<vmem>>, vector<2x8x32xf32>
    %1 = vector.shape_cast %0 : vector<2x8x32xf32> to vector<16x32xf32>
    %2 = arith.truncf %1 : vector<16x32xf32> to vector<16x32xbf16>
    %c0_2 = arith.constant 0 : index
    %c0_3 = arith.constant 0 : index
    %3 = vector.load %arg1[%c0_2, %c0_3] : memref<32x96xbf16, #tpu.memory_space<vmem>>, vector<32x96xbf16>
    %cst = arith.constant dense<0.000000e+00> : vector<16x96xf32>
    %4 = tpu.matmul %2, %3, %cst {dimension_numbers = #tpu.dot_dimension_numbers<[1], [0], [0], [1], [0, 0, 1, 1], [], []>} : vector<16x32xbf16>, vector<32x96xbf16>, vector<16x96xf32> -> vector<16x96xf32>
    %c0_4 = arith.constant 0 : index
    %c0_5 = arith.constant 0 : index
    %5 = vector.load %arg2[%c0_4, %c0_5] : memref<1x96xf32, #tpu.memory_space<vmem>>, vector<1x96xf32>
    %6 = vector.broadcast %5 : vector<1x96xf32> to vector<16x96xf32>
    %7 = arith.addf %4, %6 : vector<16x96xf32>
    %8 = vector.extract_strided_slice %7 {offsets = [0, 0], sizes = [16, 8], strides = [1, 1]} : vector<16x96xf32> to vector<16x8xf32>
    %c0_6 = arith.constant 0 : index
    %c0_7 = arith.constant 0 : index
    %c0_8 = arith.constant 0 : index
    %9 = vector.load %arg8[%c0_6, %c0_7, %c0_8] : memref<12x16x8xf32, #tpu.memory_space<vmem>>, vector<1x16x8xf32>
    %10 = vector.shape_cast %9 : vector<1x16x8xf32> to vector<16x8xf32>
    %11 = vector.shape_cast %8 : vector<16x8xf32> to vector<1x16x8xf32>
    tpu.vector_store %arg8[%c0_6, %c0_7, %c0_8], %11 {strides = array<i32>} : memref<12x16x8xf32, #tpu.memory_space<vmem>>, vector<1x16x8xf32>,
    %12 = vector.extract_strided_slice %7 {offsets = [0, 8], sizes = [16, 8], strides = [1, 1]} : vector<16x96xf32> to vector<16x8xf32>
    %c1 = arith.constant 1 : index
    %c0_9 = arith.constant 0 : index
    %c0_10 = arith.constant 0 : index
    %13 = vector.load %arg8[%c1, %c0_9, %c0_10] : memref<12x16x8xf32, #tpu.memory_space<vmem>>, vector<1x16x8xf32>
    %14 = vector.shape_cast %13 : vector<1x16x8xf32> to vector<16x8xf32>
    %15 = vector.shape_cast %12 : vector<16x8xf32> to vector<1x16x8xf32>
    tpu.vector_store %arg8[%c1, %c0_9, %c0_10], %15 {strides = array<i32>} : memref<12x16x8xf32, #tpu.memory_space<vmem>>, vector<1x16x8xf32>,
    %16 = vector.extract_strided_slice %7 {offsets = [0, 16], sizes = [16, 8], strides = [1, 1]} : vector<16x96xf32> to vector<16x8xf32>
    %c2 = arith.constant 2 : index
    %c0_11 = arith.constant 0 : index
    %c0_12 = arith.constant 0 : index
    %17 = vector.load %arg8[%c2, %c0_11, %c0_12] : memref<12x16x8xf32, #tpu.memory_space<vmem>>, vector<1x16x8xf32>
    %18 = vector.shape_cast %17 : vector<1x16x8xf32> to vector<16x8xf32>
    %19 = vector.shape_cast %16 : vector<16x8xf32> to vector<1x16x8xf32>
    tpu.vector_store %arg8[%c2, %c0_11, %c0_12], %19 {strides = array<i32>} : memref<12x16x8xf32, #tpu.memory_space<vmem>>, vector<1x16x8xf32>,
    %20 = vector.extract_strided_slice %7 {offsets = [0, 24], sizes = [16, 8], strides = [1, 1]} : vector<16x96xf32> to vector<16x8xf32>
    %c3 = arith.constant 3 : index
    %c0_13 = arith.constant 0 : index
    %c0_14 = arith.constant 0 : index
    %21 = vector.load %arg8[%c3, %c0_13, %c0_14] : memref<12x16x8xf32, #tpu.memory_space<vmem>>, vector<1x16x8xf32>
    %22 = vector.shape_cast %21 : vector<1x16x8xf32> to vector<16x8xf32>
    %23 = vector.shape_cast %20 : vector<16x8xf32> to vector<1x16x8xf32>
    tpu.vector_store %arg8[%c3, %c0_13, %c0_14], %23 {strides = array<i32>} : memref<12x16x8xf32, #tpu.memory_space<vmem>>, vector<1x16x8xf32>,
    %24 = vector.extract_strided_slice %7 {offsets = [0, 32], sizes = [16, 8], strides = [1, 1]} : vector<16x96xf32> to vector<16x8xf32>
    %c4 = arith.constant 4 : index
    %c0_15 = arith.constant 0 : index
    %c0_16 = arith.constant 0 : index
    %25 = vector.load %arg8[%c4, %c0_15, %c0_16] : memref<12x16x8xf32, #tpu.memory_space<vmem>>, vector<1x16x8xf32>
    %26 = vector.shape_cast %25 : vector<1x16x8xf32> to vector<16x8xf32>
    %27 = vector.shape_cast %24 : vector<16x8xf32> to vector<1x16x8xf32>
    tpu.vector_store %arg8[%c4, %c0_15, %c0_16], %27 {strides = array<i32>} : memref<12x16x8xf32, #tpu.memory_space<vmem>>, vector<1x16x8xf32>,
    %28 = vector.extract_strided_slice %7 {offsets = [0, 40], sizes = [16, 8], strides = [1, 1]} : vector<16x96xf32> to vector<16x8xf32>
    %c5 = arith.constant 5 : index
    %c0_17 = arith.constant 0 : index
    %c0_18 = arith.constant 0 : index
    %29 = vector.load %arg8[%c5, %c0_17, %c0_18] : memref<12x16x8xf32, #tpu.memory_space<vmem>>, vector<1x16x8xf32>
    %30 = vector.shape_cast %29 : vector<1x16x8xf32> to vector<16x8xf32>
    %31 = vector.shape_cast %28 : vector<16x8xf32> to vector<1x16x8xf32>
    tpu.vector_store %arg8[%c5, %c0_17, %c0_18], %31 {strides = array<i32>} : memref<12x16x8xf32, #tpu.memory_space<vmem>>, vector<1x16x8xf32>,
    %32 = vector.extract_strided_slice %7 {offsets = [0, 48], sizes = [16, 8], strides = [1, 1]} : vector<16x96xf32> to vector<16x8xf32>
    %c6 = arith.constant 6 : index
    %c0_19 = arith.constant 0 : index
    %c0_20 = arith.constant 0 : index
    %33 = vector.load %arg8[%c6, %c0_19, %c0_20] : memref<12x16x8xf32, #tpu.memory_space<vmem>>, vector<1x16x8xf32>
    %34 = vector.shape_cast %33 : vector<1x16x8xf32> to vector<16x8xf32>
    %35 = vector.shape_cast %32 : vector<16x8xf32> to vector<1x16x8xf32>
    tpu.vector_store %arg8[%c6, %c0_19, %c0_20], %35 {strides = array<i32>} : memref<12x16x8xf32, #tpu.memory_space<vmem>>, vector<1x16x8xf32>,
    %36 = vector.extract_strided_slice %7 {offsets = [0, 56], sizes = [16, 8], strides = [1, 1]} : vector<16x96xf32> to vector<16x8xf32>
    %c7 = arith.constant 7 : index
    %c0_21 = arith.constant 0 : index
    %c0_22 = arith.constant 0 : index
    %37 = vector.load %arg8[%c7, %c0_21, %c0_22] : memref<12x16x8xf32, #tpu.memory_space<vmem>>, vector<1x16x8xf32>
    %38 = vector.shape_cast %37 : vector<1x16x8xf32> to vector<16x8xf32>
    %39 = vector.shape_cast %36 : vector<16x8xf32> to vector<1x16x8xf32>
    tpu.vector_store %arg8[%c7, %c0_21, %c0_22], %39 {strides = array<i32>} : memref<12x16x8xf32, #tpu.memory_space<vmem>>, vector<1x16x8xf32>,
    %40 = vector.extract_strided_slice %7 {offsets = [0, 64], sizes = [16, 8], strides = [1, 1]} : vector<16x96xf32> to vector<16x8xf32>
    %c8 = arith.constant 8 : index
    %c0_23 = arith.constant 0 : index
    %c0_24 = arith.constant 0 : index
    %41 = vector.load %arg8[%c8, %c0_23, %c0_24] : memref<12x16x8xf32, #tpu.memory_space<vmem>>, vector<1x16x8xf32>
    %42 = vector.shape_cast %41 : vector<1x16x8xf32> to vector<16x8xf32>
    %43 = vector.shape_cast %40 : vector<16x8xf32> to vector<1x16x8xf32>
    tpu.vector_store %arg8[%c8, %c0_23, %c0_24], %43 {strides = array<i32>} : memref<12x16x8xf32, #tpu.memory_space<vmem>>, vector<1x16x8xf32>,
    %44 = vector.extract_strided_slice %7 {offsets = [0, 72], sizes = [16, 8], strides = [1, 1]} : vector<16x96xf32> to vector<16x8xf32>
    %c9 = arith.constant 9 : index
    %c0_25 = arith.constant 0 : index
    %c0_26 = arith.constant 0 : index
    %45 = vector.load %arg8[%c9, %c0_25, %c0_26] : memref<12x16x8xf32, #tpu.memory_space<vmem>>, vector<1x16x8xf32>
    %46 = vector.shape_cast %45 : vector<1x16x8xf32> to vector<16x8xf32>
    %47 = vector.shape_cast %44 : vector<16x8xf32> to vector<1x16x8xf32>
    tpu.vector_store %arg8[%c9, %c0_25, %c0_26], %47 {strides = array<i32>} : memref<12x16x8xf32, #tpu.memory_space<vmem>>, vector<1x16x8xf32>,
    %48 = vector.extract_strided_slice %7 {offsets = [0, 80], sizes = [16, 8], strides = [1, 1]} : vector<16x96xf32> to vector<16x8xf32>
    %c10 = arith.constant 10 : index
    %c0_27 = arith.constant 0 : index
    %c0_28 = arith.constant 0 : index
    %49 = vector.load %arg8[%c10, %c0_27, %c0_28] : memref<12x16x8xf32, #tpu.memory_space<vmem>>, vector<1x16x8xf32>
    %50 = vector.shape_cast %49 : vector<1x16x8xf32> to vector<16x8xf32>
    %51 = vector.shape_cast %48 : vector<16x8xf32> to vector<1x16x8xf32>
    tpu.vector_store %arg8[%c10, %c0_27, %c0_28], %51 {strides = array<i32>} : memref<12x16x8xf32, #tpu.memory_space<vmem>>, vector<1x16x8xf32>,
    %52 = vector.extract_strided_slice %7 {offsets = [0, 88], sizes = [16, 8], strides = [1, 1]} : vector<16x96xf32> to vector<16x8xf32>
    %c11 = arith.constant 11 : index
    %c0_29 = arith.constant 0 : index
    %c0_30 = arith.constant 0 : index
    %53 = vector.load %arg8[%c11, %c0_29, %c0_30] : memref<12x16x8xf32, #tpu.memory_space<vmem>>, vector<1x16x8xf32>
    %54 = vector.shape_cast %53 : vector<1x16x8xf32> to vector<16x8xf32>
    %55 = vector.shape_cast %52 : vector<16x8xf32> to vector<1x16x8xf32>
    tpu.vector_store %arg8[%c11, %c0_29, %c0_30], %55 {strides = array<i32>} : memref<12x16x8xf32, #tpu.memory_space<vmem>>, vector<1x16x8xf32>,
    %c0_31 = arith.constant 0 : index
    %c0_32 = arith.constant 0 : index
    %c0_33 = arith.constant 0 : index
    %56 = vector.load %arg8[%c0_31, %c0_32, %c0_33] : memref<12x16x8xf32, #tpu.memory_space<vmem>>, vector<12x16x8xf32>
    %57 = vector.extract_strided_slice %56 {offsets = [0, 0, 0], sizes = [4, 16, 8], strides = [1, 1, 1]} : vector<12x16x8xf32> to vector<4x16x8xf32>
    %58 = vector.shape_cast %57 : vector<4x16x8xf32> to vector<8x8x8xf32>
    %59 = vector.extract_strided_slice %56 {offsets = [4, 0, 0], sizes = [4, 16, 8], strides = [1, 1, 1]} : vector<12x16x8xf32> to vector<4x16x8xf32>
    %60 = vector.shape_cast %59 : vector<4x16x8xf32> to vector<8x8x8xf32>
    %61 = vector.extract_strided_slice %56 {offsets = [8, 0, 0], sizes = [4, 16, 8], strides = [1, 1, 1]} : vector<12x16x8xf32> to vector<4x16x8xf32>
    %62 = vector.shape_cast %61 : vector<4x16x8xf32> to vector<8x8x8xf32>
    "tpu.trace_start"() <{level = 10 : i32, message = "nld,nmd->nlm"}> : () -> ()
    %cst_34 = arith.constant dense<0.000000e+00> : vector<8x8x8xf32>
    %63 = tpu.matmul %58, %60, %cst_34 {dimension_numbers = #tpu.dot_dimension_numbers<[2], [2], [1], [1], [0, 0, 0, 1, 1, 1], [0], [0]>} : vector<8x8x8xf32>, vector<8x8x8xf32>, vector<8x8x8xf32> -> vector<8x8x8xf32>
    "tpu.trace_stop"() : () -> ()
    %cst_35 = arith.constant dense<0xFF800000> : vector<8x8xf32>
    %64 = vector.multi_reduction <maximumf>, %63, %cst_35 [2] : vector<8x8x8xf32> to vector<8x8xf32>
    %65 = vector.shape_cast %64 : vector<8x8xf32> to vector<8x8x1xf32>
    %66 = vector.broadcast %65 : vector<8x8x1xf32> to vector<8x8x8xf32>
    %67 = arith.subf %63, %66 : vector<8x8x8xf32>
    %68 = math.exp %67 : vector<8x8x8xf32>
    %cst_36 = arith.constant dense<0.000000e+00> : vector<8x8xf32>
    %69 = vector.multi_reduction <add>, %68, %cst_36 [2] : vector<8x8x8xf32> to vector<8x8xf32>
    %70 = vector.shape_cast %69 : vector<8x8xf32> to vector<8x8x1xf32>
    %71 = tpu.reciprocal %70 {approx = true} : vector<8x8x1xf32> -> vector<8x8x1xf32>
    %72 = vector.broadcast %71 : vector<8x8x1xf32> to vector<8x8x8xf32>
    %73 = arith.mulf %68, %72 : vector<8x8x8xf32>
    "tpu.trace_start"() <{level = 10 : i32, message = "nlm,nmd->nld"}> : () -> ()
    %cst_37 = arith.constant dense<0.000000e+00> : vector<8x8x8xf32>
    %74 = tpu.matmul %73, %62, %cst_37 {dimension_numbers = #tpu.dot_dimension_numbers<[2], [1], [1], [2], [0, 0, 0, 1, 1, 2], [0], [0]>} : vector<8x8x8xf32>, vector<8x8x8xf32>, vector<8x8x8xf32> -> vector<8x8x8xf32>
    "tpu.trace_stop"() : () -> ()
    %75 = vector.shape_cast %74 : vector<8x8x8xf32> to vector<4x16x8xf32>
    %76 = arith.truncf %75 : vector<4x16x8xf32> to vector<4x16x8xbf16>
    %c0_38 = arith.constant 0 : index
    %c0_39 = arith.constant 0 : index
    %c0_40 = arith.constant 0 : index
    %77 = vector.load %arg3[%c0_38, %c0_39, %c0_40] : memref<4x8x32xbf16, #tpu.memory_space<vmem>>, vector<4x8x32xbf16>
    "tpu.trace_start"() <{level = 10 : i32, message = "hrd,hdc->hrc"}> : () -> ()
    %cst_41 = arith.constant dense<0.000000e+00> : vector<4x16x32xf32>
    %78 = tpu.matmul %76, %77, %cst_41 {dimension_numbers = #tpu.dot_dimension_numbers<[2], [1], [1], [2], [0, 0, 0, 1, 1, 2], [0], [0]>} : vector<4x16x8xbf16>, vector<4x8x32xbf16>, vector<4x16x32xf32> -> vector<4x16x32xf32>
    "tpu.trace_stop"() : () -> ()
    %cst_42 = arith.constant dense<0.000000e+00> : vector<16x32xf32>
    %79 = vector.multi_reduction <add>, %78, %cst_42 [0] : vector<4x16x32xf32> to vector<16x32xf32>
    %c0_43 = arith.constant 0 : index
    %c0_44 = arith.constant 0 : index
    %80 = vector.load %arg4[%c0_43, %c0_44] : memref<1x32xf32, #tpu.memory_space<vmem>>, vector<1x32xf32>
    %81 = vector.broadcast %80 : vector<1x32xf32> to vector<16x32xf32>
    %82 = arith.addf %79, %81 : vector<16x32xf32>
    %83 = arith.addf %1, %82 : vector<16x32xf32>
    %cst_45 = arith.constant dense<0.000000e+00> : vector<16xf32>
    %84 = vector.multi_reduction <add>, %83, %cst_45 [1] : vector<16x32xf32> to vector<16xf32>
    %85 = vector.shape_cast %84 : vector<16xf32> to vector<16x1xf32>
    %cst_46 = arith.constant 3.125000e-02 : f32
    %86 = vector.broadcast %cst_46 : f32 to vector<16x1xf32>
    %87 = arith.mulf %85, %86 : vector<16x1xf32>
    %88 = vector.broadcast %87 : vector<16x1xf32> to vector<16x32xf32>
    %89 = arith.subf %83, %88 : vector<16x32xf32>
    %90 = arith.mulf %89, %89 : vector<16x32xf32>
    %cst_47 = arith.constant dense<0.000000e+00> : vector<16xf32>
    %91 = vector.multi_reduction <add>, %90, %cst_47 [1] : vector<16x32xf32> to vector<16xf32>
    %92 = vector.shape_cast %91 : vector<16xf32> to vector<16x1xf32>
    %cst_48 = arith.constant 3.125000e-02 : f32
    %93 = vector.broadcast %cst_48 : f32 to vector<16x1xf32>
    %94 = arith.mulf %92, %93 : vector<16x1xf32>
    %cst_49 = arith.constant 9.99999974E-6 : f32
    %95 = vector.broadcast %cst_49 : f32 to vector<16x1xf32>
    %96 = arith.addf %94, %95 : vector<16x1xf32>
    %97 = math.rsqrt %96 : vector<16x1xf32>
    %98 = vector.broadcast %97 : vector<16x1xf32> to vector<16x32xf32>
    %99 = arith.mulf %89, %98 : vector<16x32xf32>
    %c0_50 = arith.constant 0 : index
    %c0_51 = arith.constant 0 : index
    %100 = vector.load %arg5[%c0_50, %c0_51] : memref<1x32xf32, #tpu.memory_space<vmem>>, vector<1x32xf32>
    %101 = vector.broadcast %100 : vector<1x32xf32> to vector<16x32xf32>
    %102 = arith.mulf %99, %101 : vector<16x32xf32>
    %c0_52 = arith.constant 0 : index
    %c0_53 = arith.constant 0 : index
    %103 = vector.load %arg6[%c0_52, %c0_53] : memref<1x32xf32, #tpu.memory_space<vmem>>, vector<1x32xf32>
    %104 = vector.broadcast %103 : vector<1x32xf32> to vector<16x32xf32>
    %105 = arith.addf %102, %104 : vector<16x32xf32>
    %106 = vector.shape_cast %105 : vector<16x32xf32> to vector<2x8x32xf32>
    %c0_54 = arith.constant 0 : index
    %c0_55 = arith.constant 0 : index
    %c0_56 = arith.constant 0 : index
    %107 = vector.load %arg7[%c0_54, %c0_55, %c0_56] : memref<2x8x32xf32, #tpu.memory_space<vmem>>, vector<2x8x32xf32>
    tpu.vector_store %arg7[%c0_54, %c0_55, %c0_56], %106 {strides = array<i32>} : memref<2x8x32xf32, #tpu.memory_space<vmem>>, vector<2x8x32xf32>,
    return
  }
}

</mosaic_0001>

<bundles_post_ra>
// kernel: interaction_attention_layer.1
= control target key start
LH: loop header
LB: loop body
LE: loop exit
PB: predicated region body
PF: predicated region fallthrough
CT: control target
= control target key end

     0   :  { %12 = vsyncpa [#allocation4], 0  ;;  %s2057_s24 = smov [#allocation3]   ;;  %s2377_s0 = inlined_call_operand.vmem [shape: f32[2,8,32], index: 0, kind: input, shape index: {}]   ;;  %s2378_s1 = inlined_call_operand.vmem [shape: bf16[32,96], index: 1, kind: input, shape index: {}]   ;;  %s2379_s2 = inlined_call_operand.vmem [shape: f32[1,96], index: 2, kind: input, shape index: {}]   ;;  %s2380_s3 = inlined_call_operand.vmem [shape: bf16[4,8,32], index: 3, kind: input, shape index: {}]   ;;  %s2381_s4 = inlined_call_operand.vmem [shape: f32[1,32], index: 4, kind: input, shape index: {}]   ;;  %s2382_s5 = inlined_call_operand.vmem [shape: f32[1,32], index: 5, kind: input, shape index: {}]   ;;  %s2383_s6 = inlined_call_operand.hbm [shape: f32[1,32], index: 6, kind: input, shape index: {}]   ;;  %s2384_s7 = inlined_call_operand.vmem [shape: f32[2,8,32], index: 7, kind: output, shape index: {}]  }
   0x1   :  { %s31_s25 = sshll.u32 %s2057_s24, 4  ;;  %s2033_s28 = scalar_lea.hbm %s2383_s6, 16  ;;  %s32_s25 = int_to_ptr.vmem [resolvable:$true] %s31_s25 }
   0x2   :  { %p2034_p0 = scmp.ne.s32.totalorder %s2383_s6, %s2033_s28  ;;  %p2037_p1 = scmp.lt.u32.totalorder %s2033_s28, %s2383_s6 }
   0x4   :  { %p2039_p2 = pnand %p2037_p1, %p2034_p0 }
   0x6   :  { %2042 = shalt.err (!%p2039_p2)
}
   0x7   :  { %s2043_s10 = scalar_lea.vmem %s32_s25, 16  ;;  %s2047_s11 = scalar_lea.vmem %s32_s25, 32 }
   0x8   :  { %p2044_p3 = scmp.ne.s32.totalorder %s32_s25, %s2043_s10  ;;  %p2048_p4 = scmp.lt.s32.totalorder %s32_s25, %s32_s25 }
   0x9   :  { %p2049_p5 = scmp.lt.s32.totalorder %s2047_s11, %s2043_s10 }
   0xb   :  { %p2050_p6 = por %p2049_p5, %p2048_p4 }
   0xd   :  { %p2051_p7 = pnand %p2050_p6, %p2044_p3 }
   0xf   :  { %2054 = shalt.err (!%p2051_p7)
}
  0x10   :  { %34 = dma.hbm_to_vmem [thread:$0]  %s2383_s6, 16, %s32_s25, [#allocation4]  }
  0x11   :  { %2055 = dma.done.wait [#allocation4], 16  }
  0x12   :  { %2056 = vsyncadd [#allocation4], 4294967280  ;;  %v2058_v0 = vmov 0.0   ;;  %vm2059_vm0 = vmmov 0   ;;  %v1995_v1 = vld [vmem:[%s2378_s1] sm:$0xff]   ;;  %v1996_v2 = vld [vmem:[%s2378_s1 + $0x8] sm:$0xff]  }
  0x13   :  { %1869 = vmatprep.subr.bf16.mxu0 %v2058_v0  ;;  %1873 = vmatprep.mubr.msk.bf16.mxu0 %vm2059_vm0, %v2058_v0  ;;  %v2138_v3 = vld [vmem:[%s2377_s0] sm:$0xff]  ;;  %v2143_v4 = vld [vmem:[%s2377_s0 + $0x8] sm:$0xff]  ;;  %vm65_vm1 = vcmask 261120   ;;  %vm110_vm2 = vcmask 64512   ;;  %s2060_s0 = smov 88   ;;  %s2061_s22 = smov 96  }
  0x14   :  { %1877 = vmatprep.subr.mxu1 %v2058_v0  ;;  %1879 = vmatprep.mubr.msk.f32.mxu1 %vm2059_vm0, %v2058_v0  ;;  %v41_v5 = vpack.c.bf16 %v2143_v4, %v2138_v3  ;;  %v1791_v6 = vld [vmem:[%s2379_s2] ss:$0 sm:$0xff]  ;;  %s2062_s2 = smov 120   ;;  %s2063_s23 = smov 80   ;;  %vm1529_vm3 = vcmask 1043456  }
  0x15   :  { %1870 = vmatpush3.bf16.msra.mxu0 %v1995_v1  ;;  %s2064_s24 = smov 112   ;;  %s2065_s25 = smov 72  }
  0x16   :  { %1871 = vmatprep.subr.bf16.mxu0 %v2058_v0  ;;  %s2066_s26 = smov 104   ;;  %s2067_s27 = smov 64  }
  0x17   :  { %s2068_s28 = smov 48   ;;  %s2069_s29 = smov 56  }
  0x18   :  { %s2070_s30 = smov 40  }
  0x19   :  { %1872 = vmatpush3.bf16.msra.mxu0 %v1996_v2 }
  0x1a   :  { %1892 = vmatprep.subr.mxu0 %v2058_v0 }
  0x1c   :  { %1874 = vmatmul.mubr.msk.bf16.vlgmr.msra.gmra.mrb[0].mxu0 %vm65_vm1, %v41_v5 }
  0x1d   :  { %1894 = vmatprep.mubr.msk.f32.mxu0 %vm2059_vm0, %v2058_v0 }
  0xef   :  { %v103_v7 = vpop.f32.mrb[0].mxu0 }
  0xf0   :  { %v2155_v8 = vadd.f32 %v1791_v6, %v103_v7  ;;  %v1875_v9 = vpop.f32.mrb[1].mxu0 }
  0xf1   :  { %v106_v10 = vpop.f32.mrb[2].mxu0 }
  0xf2   :  { %v2157_v11 = vadd.f32 %v1791_v6, %v106_v10  ;;  %151 = vrot.lane.b32.xlu1 %v2155_v8, %s2060_s0  ;;  %142 = vrot.lane.b32.xlu0 %v2155_v8, %s2061_s22  ;;  %v1876_v12 = vpop.f32.mrb[3].mxu0  ;;  %111 = vst.msk [vmem:[#allocation2] sm:$0xff] %vm110_vm2, %v2155_v8 }
  0xf4   :  { %112 = vst.msk [vmem:[#allocation2 + $0x8] sm:$0xff] %vm110_vm2, %v2157_v11 }
  0xf6   :  { %115 = vrot.lane.b32.xlu0 %v2155_v8, %s2062_s2  ;;  %153 = vrot.lane.b32.xlu1 %v2157_v11, %s2060_s0 }
  0xf9   :  { %v214_v20 = vld [vmem:[#allocation2] sm:$0xff] }
  0xfa   :  { %117 = vrot.lane.b32.xlu1 %v2157_v11, %s2062_s2  ;;  %144 = vrot.lane.b32.xlu0 %v2157_v11, %s2061_s22 }
  0xfb   :  { %v215_v28 = vld [vmem:[#allocation2 + $0x8] sm:$0xff] }
  0xfe   :  { %162 = vrot.lane.b32.xlu1 %v2157_v11, %s2063_s23  ;;  %160 = vrot.lane.b32.xlu0 %v2155_v8, %s2063_s23 }
 0x102   :  { %126 = vrot.lane.b32.xlu1 %v2157_v11, %s2064_s24  ;;  %124 = vrot.lane.b32.xlu0 %v2155_v8, %s2064_s24 }
 0x106   :  { %171 = vrot.lane.b32.xlu1 %v2157_v11, %s2065_s25  ;;  %169 = vrot.lane.b32.xlu0 %v2155_v8, %s2065_s25 }
 0x10a   :  { %135 = vrot.lane.b32.xlu1 %v2157_v11, %s2066_s26  ;;  %133 = vrot.lane.b32.xlu0 %v2155_v8, %s2066_s26 }
 0x164   :  { %v152_v13 = vpop.permute.xlu1 %151  ;;  %v143_v14 = vpop.permute.xlu0 %142 }
 0x165   :  { %158 = vst.msk [vmem:[#allocation2 + $0x50] sm:$0xff] %vm110_vm2, %v152_v13  ;;  %149 = vst.msk [vmem:[#allocation2 + $0x40] sm:$0xff] %vm110_vm2, %v143_v14 }
 0x168   :  { %v116_v15 = vpop.permute.xlu0 %115  ;;  %v154_v16 = vpop.permute.xlu1 %153 }
 0x169   :  { %122 = vst.msk [vmem:[#allocation2 + $0x10] sm:$0xff] %vm110_vm2, %v116_v15  ;;  %159 = vst.msk [vmem:[#allocation2 + $0x58] sm:$0xff] %vm110_vm2, %v154_v16 }
 0x16c   :  { %v118_v17 = vpop.permute.xlu1 %117  ;;  %v145_v18 = vpop.permute.xlu0 %144  ;;  %v222_v19 = vld [vmem:[#allocation2 + $0x40] sm:$0xff]  ;;  %v224_v31 = vld [vmem:[#allocation2 + $0x50] sm:$0xff] }
 0x16d   :  { %123 = vst.msk [vmem:[#allocation2 + $0x18] sm:$0xff] %vm110_vm2, %v118_v17  ;;  %150 = vst.msk [vmem:[#allocation2 + $0x48] sm:$0xff] %vm110_vm2, %v145_v18  ;;  %1878 = vmatpush3.xpose.msk.msra.mxu1 %vm110_vm2, %v222_v19 }
 0x16e   :  { %1882 = vmatprep.subr.mxu1 %v2058_v0 }
 0x170   :  { %1880 = vmatmul.mubr.msk.f32.vlgmr.msra.gmra.mrb[0].mxu1 %vm110_vm2, %v214_v20  ;;  %v163_v21 = vpop.permute.xlu1 %162  ;;  %v161_v22 = vpop.permute.xlu0 %160  ;;  %v225_v23 = vld [vmem:[#allocation2 + $0x58] sm:$0xff]  ;;  %v216_v33 = vld [vmem:[#allocation2 + $0x10] sm:$0xff] }
 0x171   :  { %168 = vst.msk [vmem:[#allocation2 + $0x68] sm:$0xff] %vm110_vm2, %v163_v21  ;;  %167 = vst.msk [vmem:[#allocation2 + $0x60] sm:$0xff] %vm110_vm2, %v161_v22  ;;  %1893 = vmatpush3.xpose.msk.msra.mxu0 %vm110_vm2, %v225_v23  ;;  %1884 = vmatprep.mubr.msk.f32.mxu1 %vm2059_vm0, %v2058_v0 }
 0x172   :  { %1902 = vmatprep.subr.mxu0 %v2058_v0 }
 0x174   :  { %v127_v24 = vpop.permute.xlu1 %126  ;;  %v125_v25 = vpop.permute.xlu0 %124  ;;  %v223_v26 = vld [vmem:[#allocation2 + $0x48] sm:$0xff]  ;;  %v217_v27 = vld [vmem:[#allocation2 + $0x18] sm:$0xff] }
 0x175   :  { %132 = vst.msk [vmem:[#allocation2 + $0x28] sm:$0xff] %vm110_vm2, %v127_v24  ;;  %131 = vst.msk [vmem:[#allocation2 + $0x20] sm:$0xff] %vm110_vm2, %v125_v25  ;;  %1883 = vmatpush3.xpose.msk.msra.mxu1 %vm110_vm2, %v223_v26  ;;  %1895 = vmatmul.mubr.msk.f32.vlgmr.msra.gmra.mrb[4].mxu0 %vm110_vm2, %v217_v27 }
 0x176   :  { %1887 = vmatprep.subr.mxu1 %v2058_v0  ;;  %1904 = vmatprep.mubr.msk.f32.mxu0 %vm2059_vm0, %v2058_v0 }
 0x178   :  { %v172_v29 = vpop.permute.xlu1 %171  ;;  %v170_v30 = vpop.permute.xlu0 %169  ;;  %1885 = vmatmul.mubr.msk.f32.vlgmr.msra.gmra.mrb[2].mxu1 %vm110_vm2, %v215_v28  ;;  %v227_v32 = vld [vmem:[#allocation2 + $0x68] sm:$0xff]  ;;  %v226_v36 = vld [vmem:[#allocation2 + $0x60] sm:$0xff] }
 0x179   :  { %177 = vst.msk [vmem:[#allocation2 + $0x78] sm:$0xff] %vm110_vm2, %v172_v29  ;;  %176 = vst.msk [vmem:[#allocation2 + $0x70] sm:$0xff] %vm110_vm2, %v170_v30  ;;  %1888 = vmatpush3.xpose.msk.msra.mxu1 %vm110_vm2, %v224_v31  ;;  %1903 = vmatpush3.xpose.msk.msra.mxu0 %vm110_vm2, %v227_v32 }
 0x17a   :  { %1889 = vmatprep.mubr.msk.f32.mxu1 %vm2059_vm0, %v2058_v0  ;;  %1897 = vmatprep.subr.mxu1 %v2058_v0 }
 0x17b   :  { %1912 = vmatprep.subr.mxu0 %v2058_v0 }
 0x17c   :  { %v136_v34 = vpop.permute.xlu1 %135  ;;  %v134_v35 = vpop.permute.xlu0 %133  ;;  %1890 = vmatmul.mubr.msk.f32.vlgmr.msra.gmra.mrb[4].mxu1 %vm110_vm2, %v216_v33  ;;  %v219_v37 = vld [vmem:[#allocation2 + $0x28] sm:$0xff]  ;;  %v218_v38 = vld [vmem:[#allocation2 + $0x20] sm:$0xff] }
 0x17d   :  { %141 = vst.msk [vmem:[#allocation2 + $0x38] sm:$0xff] %vm110_vm2, %v136_v34  ;;  %140 = vst.msk [vmem:[#allocation2 + $0x30] sm:$0xff] %vm110_vm2, %v134_v35  ;;  %1898 = vmatpush3.xpose.msk.msra.mxu1 %vm110_vm2, %v226_v36  ;;  %1905 = vmatmul.mubr.msk.f32.vlgmr.msra.gmra.mrb[6].mxu0 %vm110_vm2, %v219_v37 }
 0x17e   :  { %1899 = vmatprep.mubr.msk.f32.mxu1 %vm2059_vm0, %v2058_v0  ;;  %1907 = vmatprep.subr.mxu1 %v2058_v0 }
 0x17f   :  { %1914 = vmatprep.mubr.msk.f32.mxu0 %vm2059_vm0, %v2058_v0 }
 0x180   :  { %1900 = vmatmul.mubr.msk.f32.vlgmr.msra.gmra.mrb[6].mxu1 %vm110_vm2, %v218_v38  ;;  %v228_v39 = vld [vmem:[#allocation2 + $0x70] sm:$0xff]  ;;  %v229_v40 = vld [vmem:[#allocation2 + $0x78] sm:$0xff] }
 0x181   :  { %1908 = vmatpush3.xpose.msk.msra.mxu1 %vm110_vm2, %v228_v39  ;;  %1913 = vmatpush3.xpose.msk.msra.mxu0 %vm110_vm2, %v229_v40 }
 0x182   :  { %1909 = vmatprep.mubr.msk.f32.mxu1 %vm2059_vm0, %v2058_v0  ;;  %1917 = vmatprep.subr.mxu1 %v2058_v0 }
 0x183   :  { %1922 = vmatprep.subr.mxu0 %v2058_v0 }
 0x184   :  { %v220_v41 = vld [vmem:[#allocation2 + $0x30] sm:$0xff]  ;;  %v221_v42 = vld [vmem:[#allocation2 + $0x38] sm:$0xff] }
 0x185   :  { %1910 = vmatmul.mubr.msk.f32.vlgmr.msra.gmra.mrb[8].mxu1 %vm110_vm2, %v220_v41  ;;  %1915 = vmatmul.mubr.msk.f32.vlgmr.msra.gmra.mrb[8].mxu0 %vm110_vm2, %v221_v42 }
 0x186   :  { %1919 = vmatprep.mubr.msk.f32.mxu1 %vm2059_vm0, %v2058_v0  ;;  %1924 = vmatprep.mubr.msk.f32.mxu0 %vm2059_vm0, %v2058_v0 }
 0x243   :  { %v310_v43 = vpop.f32.mrb[0].mxu1 }
 0x244   :  { %v1881_v44 = vpop.f32.mrb[1].mxu1  ;;  %v846_v45 = vsel %vm110_vm2, %v310_v43, -inf }
 0x245   :  { %847 = vmax.xlane.f32.xlu0 %v846_v45 }
 0x248   :  { %v538_v46 = vpop.f32.mrb[4].mxu0 }
 0x249   :  { %v1896_v47 = vpop.f32.mrb[5].mxu0  ;;  %v855_v48 = vsel %vm110_vm2, %v538_v46, -inf }
 0x24a   :  { %856 = vmax.xlane.f32.xlu0 %v855_v48 }
 0x24b   :  { %v386_v49 = vpop.f32.mrb[2].mxu1 }
 0x24c   :  { %v1886_v50 = vpop.f32.mrb[3].mxu1  ;;  %v849_v51 = vsel %vm110_vm2, %v386_v49, -inf }
 0x24d   :  { %850 = vmax.xlane.f32.xlu1 %v849_v51 }
 0x24f   :  { %v462_v52 = vpop.f32.mrb[4].mxu1 }
 0x250   :  { %v1891_v53 = vpop.f32.mrb[5].mxu1  ;;  %v690_v54 = vpop.f32.mrb[6].mxu0  ;;  %v852_v55 = vsel %vm110_vm2, %v462_v52, -inf }
 0x251   :  { %853 = vmax.xlane.f32.xlu0 %v852_v55  ;;  %v1906_v56 = vpop.f32.mrb[7].mxu0  ;;  %v861_v59 = vsel %vm110_vm2, %v690_v54, -inf }
 0x253   :  { %v2235_v57 = vpop.f32.mrb[6].mxu1 }
 0x254   :  { %v1901_v58 = vpop.f32.mrb[7].mxu1  ;;  %v858_v2 = vsel %vm110_vm2, %v2235_v57, -inf }
 0x255   :  { %862 = vmax.xlane.f32.xlu0 %v861_v59 }
 0x258   :  { %v2238_v60 = vpop.f32.mrb[8].mxu1  ;;  %v842_v61 = vpop.f32.mrb[8].mxu0 }
 0x259   :  { %v1911_v62 = vpop.f32.mrb[9].mxu1  ;;  %v1916_v63 = vpop.f32.mrb[9].mxu0  ;;  %v867_v1 = vsel %vm110_vm2, %v842_v61, -inf  ;;  %v864_v5 = vsel %vm110_vm2, %v2238_v60, -inf }
 0x25a   :  { %868 = vmax.xlane.f32.xlu0 %v867_v1 }
 0x25e   :  { %178 = vrot.lane.b32.xlu1 %v2155_v8, %s2067_s27 }
 0x270   :  { %180 = vrot.lane.b32.xlu0 %v2157_v11, %s2067_s27 }
 0x274   :  { %196 = vrot.lane.b32.xlu0 %v2155_v8, %s2068_s28 }
 0x282   :  { %859 = vmax.xlane.f32.xlu1 %v858_v2 }
 0x286   :  { %865 = vmax.xlane.f32.xlu1 %v864_v5 }
 0x297   :  { %187 = vrot.lane.b32.xlu1 %v2155_v8, %s2069_s29 }
 0x29b   :  { %189 = vrot.lane.b32.xlu1 %v2157_v11, %s2069_s29 }
 0x29f   :  { %198 = vrot.lane.b32.xlu1 %v2157_v11, %s2068_s28 }
 0x2d2   :  { %v848_v6 = vpop.xlane.xlu0 %847 }
 0x2d3   :  { %v870_v7 = vsub.f32 %v310_v43, %v848_v6 }
 0x2d5   :  { %v878_v9 = vmul.f32 1.442695, %v870_v7 }
 0x2d7   :  { %1997 = vpow2.f32 %v878_v9  ;;  %v857_v10 = vpop.xlane.xlu0 %856 }
 0x2d8   :  { %v873_v12 = vsub.f32 %v538_v46, %v857_v10 }
 0x2da   :  { %v884_v13 = vmul.f32 1.442695, %v873_v12  ;;  %v851_v14 = vpop.xlane.xlu1 %850 }
 0x2db   :  { %v871_v15 = vsub.f32 %v386_v49, %v851_v14 }
 0x2dc   :  { %1999 = vpow2.f32 %v884_v13 }
 0x2dd   :  { %v880_v16 = vmul.f32 1.442695, %v871_v15 }
 0x2de   :  { %v179_v17 = vpop.permute.xlu1 %178  ;;  %v854_v18 = vpop.xlane.xlu0 %853 }
 0x2df   :  { %2001 = vpow2.f32 %v880_v16  ;;  %185 = vst.msk [vmem:[#allocation2 + $0x80] sm:$0xff] %vm110_vm2, %v179_v17  ;;  %v872_v19 = vsub.f32 %v462_v52, %v854_v18 }
 0x2e1   :  { %v2252_v20 = vpop.eup %1997  ;;  %v882_v21 = vmul.f32 1.442695, %v872_v19 }
 0x2e2   :  { %v863_v22 = vpop.xlane.xlu0 %862  ;;  %v894_v23 = vsel %vm110_vm2, %v2252_v20, 0.0 }
 0x2e3   :  { %2003 = vpow2.f32 %v882_v21  ;;  %v875_v24 = vsub.f32 %v690_v54, %v863_v22  ;;  %895 = vadd.xlane.f32.xlu1 %v894_v23 }
 0x2e5   :  { %v888_v25 = vmul.f32 1.442695, %v875_v24 }
 0x2e6   :  { %v2256_v26 = vpop.eup %1999  ;;  %v230_v27 = vld [vmem:[#allocation2 + $0x80] sm:$0xff] }
 0x2e7   :  { %2005 = vpow2.f32 %v888_v25  ;;  %1918 = vmatpush3.msra.mxu1 %v230_v27  ;;  %v869_v28 = vpop.xlane.xlu0 %868  ;;  %v903_v29 = vsel %vm110_vm2, %v2256_v26, 0.0  ;;  %v1522_v27 = vld [vmem:[%s2380_s3] sm:$0xf] }
 0x2e8   :  { %v877_v30 = vsub.f32 %v842_v61, %v869_v28  ;;  %904 = vadd.xlane.f32.xlu0 %v903_v29  ;;  %1927 = vmatprep.subr.mxu1 %v2058_v0  ;;  %v1531_v28 = vsel %vm1529_vm3, %v1522_v27, 0  ;;  %v1523_v29 = vld [vmem:[%s2380_s3 + $0x4] sm:$0xf] }
 0x2e9   :  { %v2002_v31 = vpop.eup %2001 }
 0x2ea   :  { %v892_v32 = vmul.f32 1.442695, %v877_v30  ;;  %v897_v33 = vsel %vm110_vm2, %v2002_v31, 0.0  ;;  %v1578_v30 = vsel %vm1529_vm3, %v1523_v29, 0 }
 0x2eb   :  { %v181_v34 = vpop.permute.xlu0 %180 }
 0x2ec   :  { %2007 = vpow2.f32 %v892_v32  ;;  %186 = vst.msk [vmem:[#allocation2 + $0x88] sm:$0xff] %vm110_vm2, %v181_v34  ;;  %898 = vadd.xlane.f32.xlu0 %v897_v33  ;;  %v1524_v33 = vld [vmem:[%s2380_s3 + $0x8] sm:$0xf] }
 0x2ed   :  { %v2004_v35 = vpop.eup %2003 }
 0x2ee   :  { %v900_v36 = vsel %vm110_vm2, %v2004_v35, 0.0 }
 0x2ef   :  { %901 = vadd.xlane.f32.xlu1 %v900_v36  ;;  %v197_v37 = vpop.permute.xlu0 %196 }
 0x2f0   :  { %203 = vst.msk [vmem:[#allocation2 + $0xa0] sm:$0xff] %vm110_vm2, %v197_v37  ;;  %v1625_v37 = vsel %vm1529_vm3, %v1524_v33, 0 }
 0x2f1   :  { %v2265_v38 = vpop.eup %2005 }
 0x2f2   :  { %v909_v39 = vsel %vm110_vm2, %v2265_v38, 0.0 }
 0x2f3   :  { %910 = vadd.xlane.f32.xlu0 %v909_v39  ;;  %v231_v40 = vld [vmem:[#allocation2 + $0x88] sm:$0xff] }
 0x2f4   :  { %1923 = vmatpush3.msra.mxu0 %v231_v40 }
 0x2f5   :  { %1932 = vmatprep.subr.mxu0 %v2058_v0 }
 0x2f6   :  { %v2270_v41 = vpop.eup %2007 }
 0x2f7   :  { %v915_v42 = vsel %vm110_vm2, %v2270_v41, 0.0  ;;  %v234_v12 = vld [vmem:[#allocation2 + $0xa0] sm:$0xff] }
 0x2f8   :  { %916 = vadd.xlane.f32.xlu0 %v915_v42 }
 0x30e   :  { %205 = vrot.lane.b32.xlu0 %v2155_v8, %s2070_s30 }
 0x30f   :  { %v860_v43 = vpop.xlane.xlu1 %859 }
 0x310   :  { %v874_v44 = vsub.f32 %v2235_v57, %v860_v43 }
 0x312   :  { %v886_v45 = vmul.f32 1.442695, %v874_v44 }
 0x313   :  { %v866_v46 = vpop.xlane.xlu1 %865 }
 0x314   :  { %2009 = vpow2.f32 %v886_v45  ;;  %v876_v47 = vsub.f32 %v2238_v60, %v866_v46 }
 0x316   :  { %v890_v48 = vmul.f32 1.442695, %v876_v47 }
 0x317   :  { %v188_v49 = vpop.permute.xlu1 %187 }
 0x318   :  { %2011 = vpow2.f32 %v890_v48  ;;  %194 = vst.msk [vmem:[#allocation2 + $0x90] sm:$0xff] %vm110_vm2, %v188_v49 }
 0x31b   :  { %v190_v50 = vpop.permute.xlu1 %189 }
 0x31c   :  { %195 = vst.msk [vmem:[#allocation2 + $0x98] sm:$0xff] %vm110_vm2, %v190_v50 }
 0x31e   :  { %v2010_v51 = vpop.eup %2009 }
 0x31f   :  { %v199_v52 = vpop.permute.xlu1 %198  ;;  %v906_v8 = vsel %vm110_vm2, %v2010_v51, 0.0  ;;  %v232_v61 = vld [vmem:[#allocation2 + $0x90] sm:$0xff] }
 0x320   :  { %204 = vst.msk [vmem:[#allocation2 + $0xa8] sm:$0xff] %vm110_vm2, %v199_v52  ;;  %907 = vadd.xlane.f32.xlu1 %v906_v8 }
 0x322   :  { %v2281_v53 = vpop.eup %2011 }
 0x323   :  { %v912_v54 = vsel %vm110_vm2, %v2281_v53, 0.0  ;;  %v233_v6 = vld [vmem:[#allocation2 + $0x98] sm:$0xff] }
 0x324   :  { %913 = vadd.xlane.f32.xlu1 %v912_v54 }
 0x327   :  { %v235_v14 = vld [vmem:[#allocation2 + $0xa8] sm:$0xff] }
 0x335   :  { %207 = vrot.lane.b32.xlu1 %v2157_v11, %s2070_s30 }
 0x370   :  { %v896_v55 = vpop.xlane.xlu1 %895 }
 0x371   :  { %2013 = vrcp.f32 %v896_v55 }
 0x375   :  { %v905_v56 = vpop.xlane.xlu0 %904 }
 0x379   :  { %v899_v57 = vpop.xlane.xlu0 %898 }
 0x37a   :  { %2015 = vrcp.f32 %v899_v57 }
 0x37b   :  { %v2014_v58 = vpop.eup %2013  ;;  %2017 = vrcp.f32 %v905_v56 }
 0x37c   :  { %v926_v59 = vmul.f32 %v2014_v58, %v2252_v20  ;;  %v902_v60 = vpop.xlane.xlu1 %901 }
 0x37d   :  { %2019 = vrcp.f32 %v902_v60 }
 0x37e   :  { %1920 = vmatmul.mubr.msk.f32.vlgmr.msra.gmra.mrb[10].mxu1 %vm110_vm2, %v926_v59 }
 0x37f   :  { %1928 = vmatpush3.msra.mxu1 %v232_v61  ;;  %1929 = vmatprep.mubr.msk.f32.mxu1 %vm2059_vm0, %v2058_v0 }
 0x380   :  { %v911_v62 = vpop.xlane.xlu0 %910  ;;  %1937 = vmatprep.subr.mxu1 %v2058_v0 }
 0x381   :  { %2021 = vrcp.f32 %v911_v62 }
 0x384   :  { %v2016_v11 = vpop.eup %2015 }
 0x385   :  { %v927_v63 = vmul.f32 %v2016_v11, %v2002_v31  ;;  %v917_v1 = vpop.xlane.xlu0 %916  ;;  %v2018_v2 = vpop.eup %2017 }
 0x386   :  { %v929_v9 = vmul.f32 %v2018_v2, %v2256_v26 }
 0x387   :  { %v2020_v5 = vpop.eup %2019  ;;  %1925 = vmatmul.mubr.msk.f32.vlgmr.msra.gmra.mrb[10].mxu0 %vm110_vm2, %v927_v63 }
 0x388   :  { %v928_v7 = vmul.f32 %v2020_v5, %v2004_v35  ;;  %1933 = vmatpush3.msra.mxu0 %v233_v6  ;;  %1934 = vmatprep.mubr.msk.f32.mxu0 %vm2059_vm0, %v2058_v0 }
 0x389   :  { %v206_v10 = vpop.permute.xlu0 %205  ;;  %1942 = vmatprep.subr.mxu0 %v2058_v0 }
 0x38a   :  { %212 = vst.msk [vmem:[#allocation2 + $0xb0] sm:$0xff] %vm110_vm2, %v206_v10  ;;  %1930 = vmatmul.mubr.msk.f32.vlgmr.msra.gmra.mrb[12].mxu1 %vm110_vm2, %v928_v7 }
 0x38b   :  { %v2022_v13 = vpop.eup %2021  ;;  %1938 = vmatpush3.msra.mxu1 %v234_v12  ;;  %1935 = vmatmul.mubr.msk.f32.vlgmr.msra.gmra.mrb[12].mxu0 %vm110_vm2, %v929_v9 }
 0x38c   :  { %v931_v15 = vmul.f32 %v2022_v13, %v2265_v38  ;;  %1943 = vmatpush3.msra.mxu0 %v235_v14  ;;  %1944 = vmatprep.mubr.msk.f32.mxu0 %vm2059_vm0, %v2058_v0  ;;  %v1525_v38 = vld [vmem:[%s2380_s3 + $0xc] sm:$0xf] }
 0x38d   :  { %1939 = vmatprep.mubr.msk.f32.mxu1 %vm2059_vm0, %v2058_v0  ;;  %1947 = vmatprep.subr.mxu1 %v2058_v0  ;;  %v1672_v44 = vsel %vm1529_vm3, %v1525_v38, 0 }
 0x38e   :  { %1952 = vmatprep.subr.mxu0 %v2058_v0 }
 0x38f   :  { %1945 = vmatmul.mubr.msk.f32.vlgmr.msra.gmra.mrb[14].mxu0 %vm110_vm2, %v931_v15 }
 0x390   :  { %1954 = vmatprep.mubr.msk.f32.mxu0 %vm2059_vm0, %v2058_v0 }
 0x391   :  { %v236_v22 = vld [vmem:[#allocation2 + $0xb0] sm:$0xff] }
 0x3ad   :  { %v908_v16 = vpop.xlane.xlu1 %907 }
 0x3ae   :  { %2023 = vrcp.f32 %v908_v16 }
 0x3af   :  { %2025 = vrcp.f32 %v917_v1 }
 0x3b1   :  { %v914_v17 = vpop.xlane.xlu1 %913 }
 0x3b2   :  { %2027 = vrcp.f32 %v914_v17  ;;  %v1823_v17 = vld [vmem:[%s2381_s4] ss:$0 sm:$0xff] }
 0x3b5   :  { %v208_v18 = vpop.permute.xlu1 %207 }
 0x3b6   :  { %213 = vst.msk [vmem:[#allocation2 + $0xb8] sm:$0xff] %vm110_vm2, %v208_v18 }
 0x3b8   :  { %v2024_v19 = vpop.eup %2023 }
 0x3b9   :  { %v930_v20 = vmul.f32 %v2024_v19, %v2010_v51  ;;  %v2026_v21 = vpop.eup %2025 }
 0x3ba   :  { %v933_v24 = vmul.f32 %v2026_v21, %v2270_v41 }
 0x3bb   :  { %1940 = vmatmul.mubr.msk.f32.vlgmr.msra.gmra.mrb[14].mxu1 %vm110_vm2, %v930_v20 }
 0x3bc   :  { %v2028_v23 = vpop.eup %2027  ;;  %1948 = vmatpush3.msra.mxu1 %v236_v22  ;;  %1949 = vmatprep.mubr.msk.f32.mxu1 %vm2059_vm0, %v2058_v0 }
 0x3bd   :  { %v932_v25 = vmul.f32 %v2028_v23, %v2281_v53  ;;  %v237_v26 = vld [vmem:[#allocation2 + $0xb8] sm:$0xff]  ;;  %1957 = vmatprep.subr.bf16.mxu1 %v2058_v0 }
 0x3be   :  { %1953 = vmatpush3.msra.mxu0 %v237_v26 }
 0x3bf   :  { %1950 = vmatmul.mubr.msk.f32.vlgmr.msra.gmra.mrb[16].mxu1 %vm110_vm2, %v932_v25  ;;  %1955 = vmatmul.mubr.msk.f32.vlgmr.msra.gmra.mrb[16].mxu0 %vm110_vm2, %v933_v24 }
 0x3c0   :  { %1959 = vmatprep.mubr.msk.bf16.mxu1 %vm2059_vm0, %v2058_v0  ;;  %1963 = vmatprep.subr.bf16.mxu0 %v2058_v0 }
 0x3c1   :  { %1965 = vmatprep.mubr.msk.bf16.mxu0 %vm2059_vm0, %v2058_v0  ;;  %1958 = vmatpush3.bf16.msra.mxu1 %v1531_v28 }
 0x3c2   :  { %1969 = vmatprep.subr.bf16.mxu1 %v2058_v0  ;;  %1964 = vmatpush3.bf16.msra.mxu0 %v1578_v30 }
 0x3c3   :  { %1975 = vmatprep.subr.bf16.mxu0 %v2058_v0 }
 0x451   :  { %v1003_v31 = vpop.f32.mrb[10].mxu1 }
 0x452   :  { %v1921_v32 = vpop.f32.mrb[11].mxu1 }
 0x45a   :  { %v1076_v34 = vpop.f32.mrb[10].mxu0 }
 0x45b   :  { %v1518_v35 = vpack.c.bf16 %v1076_v34, %v1003_v31  ;;  %v1926_v36 = vpop.f32.mrb[11].mxu0 }
 0x45d   :  { %v1149_v39 = vpop.f32.mrb[12].mxu1  ;;  %1960 = vmatmul.mubr.msk.bf16.vlgmr.msra.gmra.mrb[20].mxu1 %vm110_vm2, %v1518_v35 }
 0x45e   :  { %v1931_v40 = vpop.f32.mrb[13].mxu1  ;;  %v1222_v41 = vpop.f32.mrb[12].mxu0  ;;  %1970 = vmatpush3.bf16.msra.mxu1 %v1625_v37  ;;  %1971 = vmatprep.mubr.msk.bf16.mxu1 %vm2059_vm0, %v2058_v0 }
 0x45f   :  { %v1519_v42 = vpack.c.bf16 %v1222_v41, %v1149_v39  ;;  %v1936_v43 = vpop.f32.mrb[13].mxu0 }
 0x461   :  { %1966 = vmatmul.mubr.msk.bf16.vlgmr.msra.gmra.mrb[20].mxu0 %vm110_vm2, %v1519_v42 }
 0x462   :  { %v1368_v45 = vpop.f32.mrb[14].mxu0  ;;  %1976 = vmatpush3.bf16.msra.mxu0 %v1672_v44  ;;  %1977 = vmatprep.mubr.msk.bf16.mxu0 %vm2059_vm0, %v2058_v0 }
 0x463   :  { %v1946_v46 = vpop.f32.mrb[15].mxu0 }
 0x48e   :  { %v1295_v47 = vpop.f32.mrb[14].mxu1 }
 0x48f   :  { %v1520_v48 = vpack.c.bf16 %v1368_v45, %v1295_v47  ;;  %v1941_v49 = vpop.f32.mrb[15].mxu1  ;;  %v1824_v45 = vld [vmem:[%s2382_s5] ss:$0 sm:$0xff] }
 0x490   :  { %v1825_v47 = vld [vmem:[#allocation3] ss:$0 sm:$0xff] }
 0x491   :  { %1972 = vmatmul.mubr.msk.bf16.vlgmr.msra.gmra.mrb[24].mxu1 %vm110_vm2, %v1520_v48 }
 0x492   :  { %v1441_v50 = vpop.f32.mrb[16].mxu1  ;;  %v1514_v51 = vpop.f32.mrb[16].mxu0 }
 0x493   :  { %v1521_v52 = vpack.c.bf16 %v1514_v51, %v1441_v50  ;;  %v1951_v8 = vpop.f32.mrb[17].mxu1  ;;  %v1956_v53 = vpop.f32.mrb[17].mxu0 }
 0x495   :  { %1978 = vmatmul.mubr.msk.bf16.vlgmr.msra.gmra.mrb[24].mxu0 %vm110_vm2, %v1521_v52 }
 0x530   :  { %v1567_v54 = vpop.f32.mrb[20].mxu1 }
 0x531   :  { %v1961_v55 = vpop.f32.mrb[21].mxu1  ;;  %v1715_v0 = vsel %vm65_vm1, %v1567_v54, 0.0 }
 0x532   :  { %v1570_v56 = vpop.f32.mrb[22].mxu1 }
 0x533   :  { %v1962_v57 = vpop.f32.mrb[23].mxu1  ;;  %v1722_v11 = vsel %vm65_vm1, %v1570_v56, 0.0 }
 0x534   :  { %v1614_v58 = vpop.f32.mrb[20].mxu0 }
 0x535   :  { %v1716_v59 = vsel %vm65_vm1, %v1614_v58, 0.0  ;;  %v1967_v60 = vpop.f32.mrb[21].mxu0 }
 0x536   :  { %v1717_v61 = vadd.f32 %v1716_v59, %v1715_v0  ;;  %v1617_v62 = vpop.f32.mrb[22].mxu0 }
 0x537   :  { %v1723_v63 = vsel %vm65_vm1, %v1617_v62, 0.0  ;;  %v1968_v1 = vpop.f32.mrb[23].mxu0 }
 0x538   :  { %v1724_v2 = vadd.f32 %v1723_v63, %v1722_v11 }
 0x564   :  { %v1661_v5 = vpop.f32.mrb[24].mxu1 }
 0x565   :  { %v1718_v6 = vsel %vm65_vm1, %v1661_v5, 0.0  ;;  %v1973_v7 = vpop.f32.mrb[25].mxu1 }
 0x566   :  { %v1719_v9 = vadd.f32 %v1718_v6, %v1717_v61  ;;  %v1664_v10 = vpop.f32.mrb[26].mxu1 }
 0x567   :  { %v1725_v12 = vsel %vm65_vm1, %v1664_v10, 0.0  ;;  %v1974_v13 = vpop.f32.mrb[27].mxu1 }
 0x568   :  { %v1726_v14 = vadd.f32 %v1725_v12, %v1724_v2  ;;  %v1708_v15 = vpop.f32.mrb[24].mxu0 }
 0x569   :  { %v1720_v16 = vsel %vm65_vm1, %v1708_v15, 0.0  ;;  %v1979_v18 = vpop.f32.mrb[25].mxu0 }
 0x56a   :  { %v1721_v19 = vadd.f32 %v1720_v16, %v1719_v9  ;;  %v1711_v20 = vpop.f32.mrb[26].mxu0 }
 0x56b   :  { %v1727_v21 = vsel %vm65_vm1, %v1711_v20, 0.0  ;;  %v1980_v22 = vpop.f32.mrb[27].mxu0 }
 0x56c   :  { %v1736_v23 = vadd.f32 %v1823_v17, %v1721_v19  ;;  %v1728_v24 = vadd.f32 %v1727_v21, %v1726_v14 }
 0x56e   :  { %v1737_v25 = vadd.f32 %v1823_v17, %v1728_v24  ;;  %v1738_v26 = vadd.f32 %v1736_v23, %v2138_v3 }
 0x570   :  { %v1740_v27 = vsel %vm65_vm1, %v1738_v26, 0.0  ;;  %v1739_v28 = vadd.f32 %v1737_v25, %v2143_v4 }
 0x571   :  { %1741 = vadd.xlane.f32.xlu0 %v1740_v27 }
 0x572   :  { %v1743_v29 = vsel %vm65_vm1, %v1739_v28, 0.0 }
 0x573   :  { %1744 = vadd.xlane.f32.xlu1 %v1743_v29 }
 0x5fe   :  { %v1742_v30 = vpop.xlane.xlu0 %1741 }
 0x5ff   :  { %v1746_v31 = vmul.f32 0.03125, %v1742_v30 }
 0x600   :  { %v1745_v32 = vpop.xlane.xlu1 %1744 }
 0x601   :  { %v1748_v33 = vsub.f32 %v1738_v26, %v1746_v31  ;;  %v1747_v34 = vmul.f32 0.03125, %v1745_v32 }
 0x603   :  { %v1749_v35 = vsub.f32 %v1739_v28, %v1747_v34  ;;  %v1750_v36 = vmul.f32 %v1748_v33, %v1748_v33 }
 0x605   :  { %v1752_v37 = vsel %vm65_vm1, %v1750_v36, 0.0  ;;  %v1751_v38 = vmul.f32 %v1749_v35, %v1749_v35 }
 0x606   :  { %1753 = vadd.xlane.f32.xlu0 %v1752_v37 }
 0x607   :  { %v1755_v3 = vsel %vm65_vm1, %v1751_v38, 0.0 }
 0x60a   :  { %1756 = vadd.xlane.f32.xlu0 %v1755_v3 }
 0x693   :  { %v1754_v39 = vpop.xlane.xlu0 %1753 }
 0x694   :  { %v1758_v4 = vmul.f32 0.03125, %v1754_v39 }
 0x696   :  { %v1760_v40 = vadd.f32 1e-05, %v1758_v4 }
 0x697   :  { %v1757_v41 = vpop.xlane.xlu0 %1756 }
 0x698   :  { %2029 = vrsqrt.f32 %v1760_v40  ;;  %v1759_v42 = vmul.f32 0.03125, %v1757_v41 }
 0x69a   :  { %v1761_v43 = vadd.f32 1e-05, %v1759_v42 }
 0x69c   :  { %2031 = vrsqrt.f32 %v1761_v43 }
 0x6a2   :  { %v2030_v44 = vpop.eup %2029 }
 0x6a3   :  { %v1764_v46 = vmul.f32 %v2030_v44, %v1748_v33 }
 0x6a5   :  { %v1773_v48 = vmul.f32 %v1824_v45, %v1764_v46 }
 0x6a6   :  { %v2032_v49 = vpop.eup %2031 }
 0x6a7   :  { %v1782_v50 = vadd.f32 %v1825_v47, %v1773_v48  ;;  %v1765_v51 = vmul.f32 %v2032_v49, %v1749_v35 }
 0x6a9   :  { %1784 = vst.msk [vmem:[%s2384_s7] sm:$0xff] %vm65_vm1, %v1782_v50  ;;  %v1774_v52 = vmul.f32 %v1824_v45, %v1765_v51 }
 0x6ab   :  { %v1783_v8 = vadd.f32 %v1825_v47, %v1774_v52 }
 0x6ad   :  { %1785 = vst.msk [vmem:[%s2384_s7 + $0x8] sm:$0xff] %vm65_vm1, %v1783_v8 }
 0x6ae   :  { %1790 = vsyncpa [#allocation4], 1 }

</bundles_post_ra>
